<compile_context>
chip_gen: v7x
topology: tpu7x:2x2x1
jax: 0.10.0
libtpu: 0.0.40
codegen_flags: <defaults>
</compile_context>

<pallas_src>
import jax
import jax.numpy as jnp
from jax import lax
from jax.experimental import pallas as pl
from jax.experimental.pallas import tpu as pltpu

DIMENSION_ONE_HOT = 24
NUMBER_OF_INPUT_FEATURES = 8 + DIMENSION_ONE_HOT   # 32
HIDDEN_LAYER_SIZE = 32
OUT_FEATURES = 1                                   # LOSS == L1_LOSS

# Max lanes per grid step.  TODO(synk): sweep 2048-8192 in production.
MAX_BATCH_TILE = 4096


def _round_up(x, m):
    return ((x + m - 1) // m) * m


def _pick_batch_tile(B):
    """Lane tile for the batch axis: multiple of 128, large enough to amortize
    per-step overhead, small enough that the grid has >=2 steps on big batches
    (v7x megacore), and never a multi-tile grid for tiny batches."""
    tile = MAX_BATCH_TILE
    # aim for >=2 grid steps once the batch is big enough
    tile = min(tile, max(_round_up(pl.cdiv(B, 2), 128), 128))
    if B <= tile:
        # single full-array block: always layout-legal, no OOB at all
        return B, 1
    return tile, pl.cdiv(B, tile)


def _mlp_kernel(x_ref, w1_ref, b1_ref, w2_ref, b2_ref, wp_ref, bp_ref, o_ref):
    # x_ref: [TB, F]  (batch tile straight from HBM, no wrapper transpose)
    # w1:    [H, F]   b1: [H, 1]
    # w2:    [H, H]   b2: [H, 1]
    # wp:    [1, H]   bp: [1, 1]
    # o_ref: [1, TB]  (lane-dense output; batch on lanes)
    x = x_ref[...]
    w2 = w2_ref[...]
    b2 = b2_ref[...]

    # l1 + relu: contract on F -> (H, TB); batch lands on the lane axis.
    h = lax.dot_general(
        w1_ref[...], x,
        dimension_numbers=(((1,), (1,)), ((), ())),
        preferred_element_type=jnp.float32,
    ) + b1_ref[...]
    h = jnp.maximum(h, 0.0)

    # l2 + relu, applied TWICE with the same weights (matches the PyTorch forward).
    h = jnp.maximum(jnp.dot(w2, h, preferred_element_type=jnp.float32) + b2, 0.0)
    h = jnp.maximum(jnp.dot(w2, h, preferred_element_type=jnp.float32) + b2, 0.0)

    # predict head: (1, H) @ (H, TB) -> (1, TB), lane-dense.
    out = jnp.dot(wp_ref[...], h, preferred_element_type=jnp.float32) + bp_ref[...]
    o_ref[...] = out.astype(o_ref.dtype)


def model_forward(x, params):
    """x: [B, NUMBER_OF_INPUT_FEATURES] float32 -> [B, 1] float32."""
    w1, b1, w2, b2, wp, bp = params
    B, F = x.shape
    tile, n_tiles = _pick_batch_tile(B)

    resident = lambda arr: pl.BlockSpec(arr.shape, lambda i: (0, 0))

    out_t = pl.pallas_call(
        _mlp_kernel,
        out_shape=jax.ShapeDtypeStruct((OUT_FEATURES, B), jnp.float32),
        grid=(n_tiles,),
        in_specs=[
            # x tiled over batch rows, pipelined HBM->VMEM; last block may be
            # partial (OOB rows undefined; their output columns are masked off).
            pl.BlockSpec((tile, F), lambda i: (i, 0)),
            resident(w1), resident(b1),
            resident(w2), resident(b2),
            resident(wp), resident(bp),
        ],
        out_specs=pl.BlockSpec((OUT_FEATURES, tile), lambda i: (0, i)),
        compiler_params=pltpu.CompilerParams(
            dimension_semantics=("parallel",),   # shard batch grid across v7x's 2 TCs
            vmem_limit_bytes=32 * 1024 * 1024,   # 2x-buffered 4096x32 f32 tile ~= 1 MiB
        ),
    )(x, w1, b1, w2, b2, wp, bp)

    # (1, B) -> (B, 1): pure order-preserving reshape (no data movement of note).
    return out_t.reshape(B, OUT_FEATURES)


def init_params(key):
    """Deterministic init mimicking nn.Linear default (U[-1/sqrt(fan_in), +]).

    Weights stored [out, in] (nn.Linear native); biases as [out, 1] columns so
    the batch-on-lanes kernel broadcasts them across the lane axis implicitly.
    """
    def linear(key, fan_in, fan_out):
        k_w, k_b = jax.random.split(key)
        bound = 1.0 / jnp.sqrt(jnp.float32(fan_in))
        w = jax.random.uniform(k_w, (fan_out, fan_in), jnp.float32, -bound, bound)
        b = jax.random.uniform(k_b, (fan_out, 1), jnp.float32, -bound, bound)
        return w, b

    k1, k2, k3 = jax.random.split(key, 3)
    w1, b1 = linear(k1, NUMBER_OF_INPUT_FEATURES, HIDDEN_LAYER_SIZE)
    w2, b2 = linear(k2, HIDDEN_LAYER_SIZE, HIDDEN_LAYER_SIZE)
    wp, bp = linear(k3, HIDDEN_LAYER_SIZE, OUT_FEATURES)
    return (w1, b1, w2, b2, wp, bp)


def reference_forward(x, params):
    """Pure-JAX reference (standard [B, F] layout) for correctness check."""
    w1, b1, w2, b2, wp, bp = params
    h = jnp.maximum(x @ w1.T + b1.T, 0.0)
    h = jnp.maximum(h @ w2.T + b2.T, 0.0)
    h = jnp.maximum(h @ w2.T + b2.T, 0.0)
    return h @ wp.T + bp.T


if __name__ == "__main__":
    key = jax.random.PRNGKey(0)
    k_x, k_p = jax.random.split(key)

    B = 8
    x = jax.random.normal(k_x, (B, NUMBER_OF_INPUT_FEATURES), jnp.float32)
    params = init_params(k_p)

    out = model_forward(x, params)
    out = jax.block_until_ready(out)

    ref = reference_forward(x, params)
    assert out.shape == (B, OUT_FEATURES)
    assert jnp.allclose(out, ref, atol=1e-5, rtol=1e-5), "mismatch vs reference"

    print("KERNEL_OK")
</pallas_src>

<mosaic_0001>
module attributes {stable_mosaic.version = 11 : i64} {
  func.func @_mlp_kernel(%arg0: i32, %arg1: memref<8x32xf32, #tpu.memory_space<vmem>>, %arg2: memref<32x32xf32, #tpu.memory_space<vmem>>, %arg3: memref<32x1xf32, #tpu.memory_space<vmem>>, %arg4: memref<32x32xf32, #tpu.memory_space<vmem>>, %arg5: memref<32x1xf32, #tpu.memory_space<vmem>>, %arg6: memref<1x32xf32, #tpu.memory_space<vmem>>, %arg7: memref<1x1xf32, #tpu.memory_space<vmem>>, %arg8: memref<1x8xf32, #tpu.memory_space<vmem>>) attributes {dimension_semantics = [#tpu.dimension_semantics<parallel>], iteration_bounds = array<i64: 1>, scalar_prefetch = 0 : i64, scratch_operands = 0 : i64, tpu.core_type = #tpu.core_type<tc>, window_params = [{transform_indices = @transform_0, window_bounds = array<i64: 8, 32>}, {pipeline_mode = #tpu.pipeline_mode<synchronous>, transform_indices = @transform_1, window_bounds = array<i64: 32, 32>}, {pipeline_mode = #tpu.pipeline_mode<synchronous>, transform_indices = @transform_2, window_bounds = array<i64: 32, 1>}, {pipeline_mode = #tpu.pipeline_mode<synchronous>, transform_indices = @transform_3, window_bounds = array<i64: 32, 32>}, {pipeline_mode = #tpu.pipeline_mode<synchronous>, transform_indices = @transform_4, window_bounds = array<i64: 32, 1>}, {pipeline_mode = #tpu.pipeline_mode<synchronous>, transform_indices = @transform_5, window_bounds = array<i64: 1, 32>}, {pipeline_mode = #tpu.pipeline_mode<synchronous>, transform_indices = @transform_6, window_bounds = array<i64: 1, 1>}, {transform_indices = @transform_7, window_bounds = array<i64: 1, 8>}]} {
    %c0 = arith.constant 0 : index
    %c0_0 = arith.constant 0 : index
    %0 = vector.load %arg1[%c0, %c0_0] : memref<8x32xf32, #tpu.memory_space<vmem>>, vector<8x32xf32>
    %c0_1 = arith.constant 0 : index
    %c0_2 = arith.constant 0 : index
    %1 = vector.load %arg4[%c0_1, %c0_2] : memref<32x32xf32, #tpu.memory_space<vmem>>, vector<32x32xf32>
    %c0_3 = arith.constant 0 : index
    %c0_4 = arith.constant 0 : index
    %2 = vector.load %arg5[%c0_3, %c0_4] : memref<32x1xf32, #tpu.memory_space<vmem>>, vector<32x1xf32>
    %c0_5 = arith.constant 0 : index
    %c0_6 = arith.constant 0 : index
    %3 = vector.load %arg2[%c0_5, %c0_6] : memref<32x32xf32, #tpu.memory_space<vmem>>, vector<32x32xf32>
    %cst = arith.constant dense<0.000000e+00> : vector<32x8xf32>
    %4 = tpu.matmul %3, %0, %cst {dimension_numbers = #tpu.dot_dimension_numbers<[1], [1], [0], [0], [0, 0, 1, 0], [], []>} : vector<32x32xf32>, vector<8x32xf32>, vector<32x8xf32> -> vector<32x8xf32>
    %c0_7 = arith.constant 0 : index
    %c0_8 = arith.constant 0 : index
    %5 = vector.load %arg3[%c0_7, %c0_8] : memref<32x1xf32, #tpu.memory_space<vmem>>, vector<32x1xf32>
    %6 = vector.broadcast %5 : vector<32x1xf32> to vector<32x8xf32>
    %7 = arith.addf %4, %6 : vector<32x8xf32>
    %cst_9 = arith.constant 0.000000e+00 : f32
    %8 = vector.broadcast %cst_9 : f32 to vector<32x8xf32>
    %9 = arith.maximumf %7, %8 : vector<32x8xf32>
    %cst_10 = arith.constant dense<0.000000e+00> : vector<32x8xf32>
    %10 = tpu.matmul %1, %9, %cst_10 {dimension_numbers = #tpu.dot_dimension_numbers<[1], [0], [0], [1], [0, 0, 1, 1], [], []>} : vector<32x32xf32>, vector<32x8xf32>, vector<32x8xf32> -> vector<32x8xf32>
    %11 = vector.broadcast %2 : vector<32x1xf32> to vector<32x8xf32>
    %12 = arith.addf %10, %11 : vector<32x8xf32>
    %cst_11 = arith.constant 0.000000e+00 : f32
    %13 = vector.broadcast %cst_11 : f32 to vector<32x8xf32>
    %14 = arith.maximumf %12, %13 : vector<32x8xf32>
    %cst_12 = arith.constant dense<0.000000e+00> : vector<32x8xf32>
    %15 = tpu.matmul %1, %14, %cst_12 {dimension_numbers = #tpu.dot_dimension_numbers<[1], [0], [0], [1], [0, 0, 1, 1], [], []>} : vector<32x32xf32>, vector<32x8xf32>, vector<32x8xf32> -> vector<32x8xf32>
    %16 = vector.broadcast %2 : vector<32x1xf32> to vector<32x8xf32>
    %17 = arith.addf %15, %16 : vector<32x8xf32>
    %cst_13 = arith.constant 0.000000e+00 : f32
    %18 = vector.broadcast %cst_13 : f32 to vector<32x8xf32>
    %19 = arith.maximumf %17, %18 : vector<32x8xf32>
    %c0_14 = arith.constant 0 : index
    %c0_15 = arith.constant 0 : index
    %20 = vector.load %arg6[%c0_14, %c0_15] : memref<1x32xf32, #tpu.memory_space<vmem>>, vector<1x32xf32>
    %cst_16 = arith.constant dense<0.000000e+00> : vector<1x8xf32>
    %21 = tpu.matmul %20, %19, %cst_16 {dimension_numbers = #tpu.dot_dimension_numbers<[1], [0], [0], [1], [0, 0, 1, 1], [], []>} : vector<1x32xf32>, vector<32x8xf32>, vector<1x8xf32> -> vector<1x8xf32>
    %c0_17 = arith.constant 0 : index
    %c0_18 = arith.constant 0 : index
    %22 = vector.load %arg7[%c0_17, %c0_18] : memref<1x1xf32, #tpu.memory_space<vmem>>, vector<1x1xf32>
    %23 = vector.broadcast %22 : vector<1x1xf32> to vector<1x8xf32>
    %24 = arith.addf %21, %23 : vector<1x8xf32>
    %c0_19 = arith.constant 0 : index
    %c0_20 = arith.constant 0 : index
    %25 = vector.load %arg8[%c0_19, %c0_20] : memref<1x8xf32, #tpu.memory_space<vmem>>, vector<1x8xf32>
    tpu.vector_store %arg8[%c0_19, %c0_20], %24 {strides = array<i32>} : memref<1x8xf32, #tpu.memory_space<vmem>>, vector<1x8xf32>,
    return
  }
  func.func @transform_0(%arg0: i32) -> (i32, i32) {
    %c0_i32 = arith.constant 0 : i32
    %c0_i32_0 = arith.constant 0 : i32
    return %arg0, %c0_i32 : i32, i32
  }
  func.func @transform_1(%arg0: i32) -> (i32, i32) {
    %c0_i32 = arith.constant 0 : i32
    %c0_i32_0 = arith.constant 0 : i32
    %c0_i32_1 = arith.constant 0 : i32
    return %c0_i32, %c0_i32_0 : i32, i32
  }
  func.func @transform_2(%arg0: i32) -> (i32, i32) {
    %c0_i32 = arith.constant 0 : i32
    %c0_i32_0 = arith.constant 0 : i32
    %c0_i32_1 = arith.constant 0 : i32
    return %c0_i32, %c0_i32_0 : i32, i32
  }
  func.func @transform_3(%arg0: i32) -> (i32, i32) {
    %c0_i32 = arith.constant 0 : i32
    %c0_i32_0 = arith.constant 0 : i32
    %c0_i32_1 = arith.constant 0 : i32
    return %c0_i32, %c0_i32_0 : i32, i32
  }
  func.func @transform_4(%arg0: i32) -> (i32, i32) {
    %c0_i32 = arith.constant 0 : i32
    %c0_i32_0 = arith.constant 0 : i32
    %c0_i32_1 = arith.constant 0 : i32
    return %c0_i32, %c0_i32_0 : i32, i32
  }
  func.func @transform_5(%arg0: i32) -> (i32, i32) {
    %c0_i32 = arith.constant 0 : i32
    %c0_i32_0 = arith.constant 0 : i32
    %c0_i32_1 = arith.constant 0 : i32
    return %c0_i32, %c0_i32_0 : i32, i32
  }
  func.func @transform_6(%arg0: i32) -> (i32, i32) {
    %c0_i32 = arith.constant 0 : i32
    %c0_i32_0 = arith.constant 0 : i32
    %c0_i32_1 = arith.constant 0 : i32
    return %c0_i32, %c0_i32_0 : i32, i32
  }
  func.func @transform_7(%arg0: i32) -> (i32, i32) {
    %c0_i32 = arith.constant 0 : i32
    %c0_i32_0 = arith.constant 0 : i32
    return %c0_i32, %arg0 : i32, i32
  }
}

</mosaic_0001>

<bundles_post_ra>
// kernel: tpu_custom_call.1
= control target key start
LH: loop header
LB: loop body
LE: loop exit
PB: predicated region body
PF: predicated region fallthrough
CT: control target
= control target key end

     0   :  { %s798_s0 = inlined_call_operand.hbm [shape: f32[8,32], index: 0, kind: input, shape index: {}]   ;;  %s799_s1 = inlined_call_operand.vmem [shape: f32[32,32], index: 1, kind: input, shape index: {}]   ;;  %s800_s2 = inlined_call_operand.vmem [shape: f32[32,1], index: 2, kind: input, shape index: {}]   ;;  %s801_s3 = inlined_call_operand.vmem [shape: f32[32,32], index: 3, kind: input, shape index: {}]   ;;  %s802_s4 = inlined_call_operand.vmem [shape: f32[32,1], index: 4, kind: input, shape index: {}]   ;;  %s803_s5 = inlined_call_operand.vmem [shape: f32[1,32], index: 5, kind: input, shape index: {}]   ;;  %s804_s6 = inlined_call_operand.<no memory space> [shape: f32[1,1], index: 6, kind: input, shape index: {}]   ;;  %s805_s7 = inlined_call_operand.hbm [shape: f32[1,8], index: 7, kind: output, shape index: {}]  }
   0x1   :  { %v12_v0 = vstv %s804_s6 }
   0x2   :  { %13 = vst [vmem:[#allocation2] sm:$0x1] %v12_v0 }
   0x3   :  { %14 = vsyncpa [#allocation4], 0 }
   0x4   :  { %15 = vsyncpa [#allocation5], 0  ;;  %s659_s26 = smov [#allocation3]   ;;  %s611_s30 = scalar_lea.hbm %s798_s0, 128 }
   0x5   :  { %s22_s27 = sshll.u32 %s659_s26, 4  ;;  %p612_p0 = scmp.ne.s32.totalorder %s798_s0, %s611_s30  ;;  %s23_s27 = int_to_ptr.vmem [resolvable:$true] %s22_s27 }
   0x6   :  { %p615_p1 = scmp.lt.u32.totalorder %s611_s30, %s798_s0 }
   0x8   :  { %p617_p2 = pnand %p615_p1, %p612_p0 }
   0xa   :  { %620 = shalt.err (!%p617_p2)
}
   0xb   :  { %s621_s6 = scalar_lea.vmem %s23_s27, 128  ;;  %p626_p4 = scmp.lt.s32.totalorder %s23_s27, %s23_s27 }
   0xc   :  { %p622_p3 = scmp.ne.s32.totalorder %s23_s27, %s621_s6  ;;  %p627_p5 = scmp.lt.s32.totalorder %s621_s6, %s621_s6 }
   0xe   :  { %p628_p6 = por %p627_p5, %p626_p4 }
  0x10   :  { %p629_p7 = pnand %p628_p6, %p622_p3 }
  0x12   :  { %632 = shalt.err (!%p629_p7)
}
  0x13   :  { %25 = dma.hbm_to_vmem [thread:$0]  %s798_s0, 128, %s23_s27, [#allocation4]  }
  0x14   :  { %655 = dma.done.wait [#allocation4], 128  }
  0x15   :  { %656 = vsyncadd [#allocation4], 4294967168  ;;  %v660_v1 = vmov 0   ;;  %vm78_vm0 = vcmask 261120   ;;  %v41_v2 = vld [vmem:[#allocation3] sm:$0xff]  ;;  %v56_v6 = vld [vmem:[%s800_s2 + $0x10] sm:$0xff] }
  0x16   :  { %609 = vset.pattern.permute.xlu0 %v660_v1  ;;  %610 = vset.pattern.permute.xlu1 %v660_v1  ;;  %v50_v3 = vld [vmem:[%s799_s1] sm:$0xff]  ;;  %v51_v5 = vld [vmem:[%s799_s1 + $0x8] sm:$0xff]  ;;  %v52_v7 = vld [vmem:[%s799_s1 + $0x10] sm:$0xff]  ;;  %v661_v56 = vmov 0.0|0.0   ;;  %vm662_vm1 = vmmov 0   ;;  %v663_v57 = vmov 0.0  }
  0x17   :  { %534 = vmatprep.subr.msk.mxu0 %vm78_vm0, %v41_v2  ;;  %536 = vmatprep.mubr.msk.f32.mxu0 %vm78_vm0, %v50_v3  ;;  %v54_v4 = vld [vmem:[%s800_s2] sm:$0xff]  ;;  %v55_v8 = vld [vmem:[%s800_s2 + $0x8] sm:$0xff]  ;;  %v57_v9 = vld [vmem:[%s800_s2 + $0x18] sm:$0xff]  ;;  %s664_s18 = smov [#allocation6]   ;;  %vm477_vm2 = vcmask 57344  }
  0x18   :  { %535 = vmatpush3.xpose.msk.msra.mxu0 %vm78_vm0, %v41_v2  ;;  %60 = vperm.xlu0 %609, %v54_v4   ;;  %v53_v10 = vld [vmem:[%s799_s1 + $0x18] sm:$0xff]  ;;  %v46_v11 = vld [vmem:[%s802_s4] sm:$0xff]  ;;  %v47_v12 = vld [vmem:[%s802_s4 + $0x8] sm:$0xff]  ;;  %s485_s19 = sshll.u32 %s664_s18, 4  ;;  %s486_s19 = int_to_ptr.vmem [resolvable:$true] %s485_s19 }
  0x19   :  { %70 = vperm.xlu1 %610, %v56_v6   ;;  %v48_v13 = vld [vmem:[%s802_s4 + $0x10] sm:$0xff]  ;;  %v49_v14 = vld [vmem:[%s802_s4 + $0x18] sm:$0xff]  ;;  %v394_v15 = vld [vmem:[#allocation2] sm:$0x1]  ;;  %s633_s20 = scalar_lea.vmem %s486_s19, 16  ;;  %s637_s21 = scalar_lea.vmem %s486_s19, 32 }
  0x1a   :  { %v42_v16 = vld [vmem:[%s801_s3] sm:$0xff]  ;;  %v43_v35 = vld [vmem:[%s801_s3 + $0x8] sm:$0xff]  ;;  %v44_v36 = vld [vmem:[%s801_s3 + $0x10] sm:$0xff]  ;;  %p634_p8 = scmp.ne.s32.totalorder %s486_s19, %s633_s20  ;;  %p638_p9 = scmp.lt.s32.totalorder %s486_s19, %s486_s19 }
  0x1b   :  { %537 = vmatmul.mubr.msk.f32.vlgmr.msra.gmra.mrb[0].mxu0 %vm78_vm0, %v51_v5  ;;  %550 = vmatprep.mubr.msk.f32.mxu1 %vm78_vm0, %v42_v16  ;;  %v45_v37 = vld [vmem:[%s801_s3 + $0x18] sm:$0xff]  ;;  %p639_p10 = scmp.lt.s32.totalorder %s637_s21, %s633_s20 }
  0x1c   :  { %539 = vmatprep.mubr.msk.f32.mxu0 %vm78_vm0, %v52_v7  ;;  %65 = vperm.xlu0 %609, %v55_v8   ;;  %v393_v8 = vld [vmem:[%s803_s5] sm:$0x1] }
  0x1d   :  { %75 = vperm.xlu1 %610, %v57_v9   ;;  %v400_v9 = vlaneseq  ;;  %p640_p11 = por %p639_p10, %p638_p9 }
  0x1f   :  { %540 = vmatmul.mubr.msk.f32.gmra.mrb[2].mxu0 %vm78_vm0, %v53_v10  ;;  %v401_v10 = vshrl.u32 %v400_v9, 7  ;;  %p641_p12 = pnand %p640_p11, %p634_p8 }
  0x20   :  { %185 = vperm.xlu0 %609, %v46_v11   ;;  %564 = vmatprep.mubr.msk.f32.mxu0 %vm78_vm0, %v42_v16 }
  0x21   :  { %190 = vperm.xlu1 %610, %v47_v12   ;;  %v402_v11 = vsub.s32 0, %v401_v10 }
  0x24   :  { %195 = vperm.xlu0 %609, %v48_v13  }
  0x25   :  { %200 = vperm.xlu1 %610, %v49_v14  }
  0x28   :  { %397 = vperm.xlu0 %609, %v394_v15  }
  0x97   :  { %v61_v17 = vpop.permute.xlu0 %60 }
  0x98   :  { %v71_v18 = vpop.permute.xlu1 %70 }
  0x9b   :  { %v66_v19 = vpop.permute.xlu0 %65 }
  0x9c   :  { %v76_v25 = vpop.permute.xlu1 %75 }
  0x9f   :  { %v186_v39 = vpop.permute.xlu0 %185 }
  0xa0   :  { %v191_v38 = vpop.permute.xlu1 %190 }
  0xa3   :  { %v196_v48 = vpop.permute.xlu0 %195 }
  0xa4   :  { %v201_v45 = vpop.permute.xlu1 %200 }
  0xa7   :  { %v398_v12 = vpop.permute.xlu0 %397 }
  0xa8   :  { %v403_v13 = vrot.slane %v398_v12, %v402_v11 }
  0xee   :  { %v538_v20 = vpop.f32.mrb[0].mxu0 }
  0xef   :  { %v166_v21 = vadd.f32 %v538_v20, %v66_v19  ;;  %v160_v22 = vpop.f32.mrb[1].mxu0 }
  0xf0   :  { %v161_v23 = vadd.f32 %v160_v22, %v61_v17 }
  0xf1   :  { %v180_v24 = vmax.f32 %v166_v21, 0.0 }
  0xf2   :  { %v179_v26 = vmax.f32 %v161_v23, 0.0  ;;  %v541_v27 = vpop.f32.mrb[2].mxu0 }
  0xf3   :  { %v176_v28 = vadd.f32 %v541_v27, %v76_v25  ;;  %v170_v29 = vpop.f32.mrb[3].mxu0 }
  0xf4   :  { %v171_v30 = vadd.f32 %v170_v29, %v71_v18  ;;  %v581_v31 = vpack.c.bf16 %v180_v24, %v179_v26 }
  0xf5   :  { %v182_v32 = vmax.f32 %v176_v28, 0.0 }
  0xf6   :  { %v181_v33 = vmax.f32 %v171_v30, 0.0  ;;  %582 = vmatprep.subr.bf16.mxu1 %v581_v31 }
  0xf7   :  { %584 = vmatpush3.bf16.msra.mxu1 %v581_v31 }
  0xf8   :  { %v585_v34 = vpack.c.bf16 %v182_v32, %v181_v33 }
  0xfa   :  { %586 = vmatprep.subr.bf16.mxu1 %v585_v34 }
  0xfb   :  { %588 = vmatpush3.bf16.msra.mxu1 %v585_v34 }
  0xfc   :  { %597 = vmatprep.subr.bf16.mxu1 %v661_v56 }
  0xfe   :  { %551 = vmatmul.mubr.msk.f32.vlgmr.msra.gmra.mrb[0].mxu1 %vm78_vm0, %v43_v35 }
  0xff   :  { %553 = vmatprep.mubr.msk.f32.mxu1 %vm78_vm0, %v44_v36 }
 0x102   :  { %554 = vmatmul.mubr.msk.f32.gmra.mrb[2].mxu1 %vm78_vm0, %v45_v37 }
 0x103   :  { %578 = vmatprep.mubr.msk.f32.mxu1 %vm662_vm1, %v663_v57 }
 0x1d1   :  { %v552_v40 = vpop.f32.mrb[0].mxu1 }
 0x1d2   :  { %v287_v41 = vadd.f32 %v552_v40, %v191_v38  ;;  %v281_v42 = vpop.f32.mrb[1].mxu1 }
 0x1d3   :  { %v282_v43 = vadd.f32 %v281_v42, %v186_v39 }
 0x1d4   :  { %v301_v44 = vmax.f32 %v287_v41, 0.0 }
 0x1d5   :  { %v300_v46 = vmax.f32 %v282_v43, 0.0  ;;  %v555_v47 = vpop.f32.mrb[2].mxu1 }
 0x1d6   :  { %v297_v49 = vadd.f32 %v555_v47, %v201_v45  ;;  %v291_v50 = vpop.f32.mrb[3].mxu1 }
 0x1d7   :  { %v589_v51 = vpack.c.bf16 %v301_v44, %v300_v46  ;;  %v292_v52 = vadd.f32 %v291_v50, %v196_v48 }
 0x1d8   :  { %v303_v53 = vmax.f32 %v297_v49, 0.0 }
 0x1d9   :  { %v302_v54 = vmax.f32 %v292_v52, 0.0  ;;  %590 = vmatprep.subr.bf16.mxu0 %v589_v51 }
 0x1da   :  { %592 = vmatpush3.bf16.msra.mxu0 %v589_v51 }
 0x1db   :  { %v593_v55 = vpack.c.bf16 %v303_v53, %v302_v54 }
 0x1dd   :  { %594 = vmatprep.subr.bf16.mxu0 %v593_v55 }
 0x1de   :  { %596 = vmatpush3.bf16.msra.mxu0 %v593_v55 }
 0x1e1   :  { %565 = vmatmul.mubr.msk.f32.vlgmr.msra.gmra.mrb[4].mxu0 %vm78_vm0, %v43_v35 }
 0x1e2   :  { %567 = vmatprep.mubr.msk.f32.mxu0 %vm78_vm0, %v44_v36 }
 0x1e5   :  { %568 = vmatmul.mubr.msk.f32.gmra.mrb[6].mxu0 %vm78_vm0, %v45_v37 }
 0x2b4   :  { %v566_v58 = vpop.f32.mrb[4].mxu0 }
 0x2b5   :  { %v376_v59 = vadd.f32 %v566_v58, %v191_v38  ;;  %v370_v60 = vpop.f32.mrb[5].mxu0 }
 0x2b6   :  { %v371_v61 = vadd.f32 %v370_v60, %v186_v39 }
 0x2b7   :  { %v390_v62 = vmax.f32 %v376_v59, 0.0 }
 0x2b8   :  { %v389_v63 = vmax.f32 %v371_v61, 0.0  ;;  %v569_v0 = vpop.f32.mrb[6].mxu0 }
 0x2b9   :  { %v386_v1 = vadd.f32 %v569_v0, %v201_v45  ;;  %v380_v2 = vpop.f32.mrb[7].mxu0 }
 0x2ba   :  { %v598_v3 = vpack.c.bf16 %v390_v62, %v389_v63  ;;  %v381_v4 = vadd.f32 %v380_v2, %v196_v48 }
 0x2bb   :  { %v392_v5 = vmax.f32 %v386_v1, 0.0 }
 0x2bc   :  { %v391_v6 = vmax.f32 %v381_v4, 0.0  ;;  %599 = vmatpush3.bf16.msra.mxu1 %v598_v3 }
 0x2bd   :  { %600 = vmatprep.subr.bf16.mxu1 %v661_v56 }
 0x2be   :  { %v601_v7 = vpack.c.bf16 %v392_v5, %v391_v6 }
 0x2c0   :  { %602 = vmatpush3.bf16.msra.mxu1 %v601_v7 }
 0x2c3   :  { %579 = vmatmul.mubr.msk.f32.vlgmr.msra.gmra.mrb[4].mxu1 %vm78_vm0, %v393_v8 }
 0x396   :  { %v473_v14 = vpop.f32.mrb[4].mxu1 }
 0x397   :  { %v474_v15 = vadd.f32 %v473_v14, %v403_v13  ;;  %v580_v16 = vpop.f32.mrb[5].mxu1 }
 0x399   :  { %478 = vst.msk [vmem:[#allocation6] sm:$0x1] %vm477_vm2, %v474_v15 }
 0x39a   :  { %644 = shalt.err (!%p641_p12)
}
 0x39b   :  { %s645_s23 = scalar_lea.hbm %s805_s7, 16 }
 0x39c   :  { %p646_p13 = scmp.ne.s32.totalorder %s805_s7, %s645_s23  ;;  %p649_p0 = scmp.lt.u32.totalorder %s645_s23, %s805_s7 }
 0x39e   :  { %p651_p1 = pnand %p649_p0, %p646_p13 }
 0x3a0   :  { %654 = shalt.err (!%p651_p1)
}
 0x3a1   :  { %488 = dma.vmem_to_hbm [thread:$0]  %s486_s19, 16, %s805_s7, [#allocation5]  }
 0x3a2   :  { %657 = dma.done.wait [#allocation5], 16  }
 0x3a3   :  { %658 = vsyncadd [#allocation5], 4294967280 }
 0x3a4   :  { %492 = vsyncpa [#allocation4], 1 }
 0x3a5   :  { %493 = vsyncpa [#allocation5], 1 }

</bundles_post_ra>
